<compile_context>
chip_gen: v6e
topology: v6e:2x2x1
jax: 0.10.0
libtpu: 0.0.40
codegen_flags: <defaults>
</compile_context>

<pallas_src>
from functools import partial

import jax
import jax.numpy as jnp
from jax.experimental import pallas as pl
from jax.experimental.pallas import tpu as pltpu


def _conv_block_kernel(p_ref, w_ref, o_ref, *, activation):
    """One grid step = Tb timesteps fused into a single block-diagonal MXU matmul.

    p_ref: (1, Tb*(K*K*Cin+1), B*H*W)   bf16   (last row of each timestep block = 1.0)
    w_ref: (1, Tb*Cout, Tb*(K*K*Cin+1)) bf16   (block-diagonal, bias in last column)
    o_ref: (1, Tb*Cout, B*H*W)          f32
    """
    acc = jnp.dot(w_ref[0], p_ref[0], preferred_element_type=jnp.float32)  # (Tb*Cout, BHW) f32
    if activation == "sigmoid":
        # exp and approx-reciprocal both go to the EUP slot (free vs. VALU divide).
        acc = pl.reciprocal(1.0 + jnp.exp(-acc), approx=True)
    else:
        acc = jnp.maximum(acc, 0.0)
    o_ref[0] = acc.astype(o_ref.dtype)


def activation_time_distribution(x, weights, biases, activation="sigmoid", t_block=4):
    """x: (B, T, Cin, H, W) float32 (PyTorch layout).
       weights: (T, K, K, Cin, Cout), biases: (T, Cout).
       returns: (B, T, Cout, H, W) float32."""
    B, T, Cin, H, W = x.shape
    Tw, K, K2, CinW, Cout = weights.shape
    assert Tw == T and K == K2 and CinW == Cin
    assert K % 2 == 1, "padding=(K-1)//2 matches PyTorch Conv2d 'same' only for odd K"
    p = (K - 1) // 2
    KKC = K * K * Cin
    KKC1 = KKC + 1            # +1 ones-row so bias folds into the contraction
    BHW = B * H * W

    # >= 2 grid steps whenever T >= 2, so the "parallel" axis shards across both
    # v7x TensorCores; tail timesteps are zero-padded and sliced off afterwards.
    Tb = max(1, min(t_block, T // 2))
    nblk = pl.cdiv(T, Tb)
    T_pad = nblk * Tb
    pad_t = T_pad - T

    # ---- im2col + layout in the wrapper (single fused XLA pre-pass) ----------
    x_t = jnp.transpose(x, (1, 2, 0, 3, 4))                          # (T, Cin, B, H, W)
    x_pad = jnp.pad(x_t, ((0, 0), (0, 0), (0, 0), (p, p), (p, p)))   # pad H, W
    cols = [x_pad[:, :, :, kh:kh + H, kw:kw + W]                     # each (T, Cin, B, H, W)
            for kh in range(K) for kw in range(K)]
    patches = jnp.stack(cols, axis=1).reshape(T, KKC, BHW)           # (T, K*K*Cin, B*H*W)
    ones_row = jnp.ones((T, 1, BHW), patches.dtype)
    patches = jnp.concatenate([patches, ones_row], axis=1)           # (T, KKC1, BHW)
    if pad_t:
        patches = jnp.pad(patches, ((0, pad_t), (0, 0), (0, 0)))
    # Fused per-block layout; cast the dominant HBM stream to bf16 (f32 accumulation).
    patches = patches.reshape(nblk, Tb * KKC1, BHW).astype(jnp.bfloat16)

    # ---- fused block-diagonal weights (bias folded as last column per block) ----
    w_t = jnp.transpose(weights, (0, 4, 1, 2, 3)).reshape(T, Cout, KKC)   # (T, Cout, KKC)
    w_full = jnp.concatenate([w_t, biases.reshape(T, Cout, 1)], axis=2)   # (T, Cout, KKC1)
    if pad_t:
        w_full = jnp.pad(w_full, ((0, pad_t), (0, 0), (0, 0)))
    w_blocks = w_full.reshape(nblk, Tb, Cout, KKC1)
    eye = jnp.eye(Tb, dtype=w_full.dtype)
    w_bd = jnp.einsum("ntck,ts->ntcsk", w_blocks, eye)                    # zero off-diagonal
    w_bd = w_bd.reshape(nblk, Tb * Cout, Tb * KKC1).astype(jnp.bfloat16)

    kernel = partial(_conv_block_kernel, activation=activation)

    flops = 2 * nblk * (Tb * Cout) * (Tb * KKC1) * BHW
    bytes_accessed = patches.size * 2 + w_bd.size * 2 + nblk * Tb * Cout * BHW * 4
    transcendentals = T_pad * Cout * BHW if activation == "sigmoid" else 0

    # VMEM budget: 2 * (Tb*KKC1*BHW + Tb*Cout*Tb*KKC1) * 2B + 2 * Tb*Cout*BHW * 4B
    # must stay <= ~56 MiB (v7x physical VMEM = 64 MiB). At these demo sizes each
    # block is ~0.3 MiB; at scale, tile BHW with an extra parallel grid axis
    # (tile width a multiple of 128) instead of shrinking Tb.
    out = pl.pallas_call(
        kernel,
        out_shape=jax.ShapeDtypeStruct((nblk, Tb * Cout, BHW), jnp.float32),
        grid=(nblk,),
        in_specs=[
            pl.BlockSpec((1, Tb * KKC1, BHW), lambda i: (i, 0, 0)),
            pl.BlockSpec((1, Tb * Cout, Tb * KKC1), lambda i: (i, 0, 0)),
        ],
        out_specs=pl.BlockSpec((1, Tb * Cout, BHW), lambda i: (i, 0, 0)),
        compiler_params=pltpu.CompilerParams(
            dimension_semantics=("parallel",),
            vmem_limit_bytes=56 << 20,
        ),
        cost_estimate=pl.CostEstimate(
            flops=flops,
            transcendentals=transcendentals,
            bytes_accessed=bytes_accessed,
        ),
    )(patches, w_bd)

    # (nblk, Tb*Cout, BHW) -> (T_pad, Cout, B, H, W) -> drop pad -> PyTorch layout.
    out = out.reshape(T_pad, Cout, B, H, W)[:T]
    return jnp.transpose(out, (2, 0, 1, 3, 4))


def _init_params(key, T, Cin, Cout, K):
    """Deterministic synthetic init, PyTorch-Conv2d-style uniform bounds."""
    kw, kb = jax.random.split(key)
    bound = 1.0 / jnp.sqrt(jnp.float32(Cin * K * K))
    weights = jax.random.uniform(kw, (T, K, K, Cin, Cout), jnp.float32, -bound, bound)
    biases = jax.random.uniform(kb, (T, Cout), jnp.float32, -bound, bound)
    return weights, biases


def _reference(x, weights, biases, activation="sigmoid"):
    """Pure-JAX reference using lax.conv (sanity check)."""
    B, T, Cin, H, W = x.shape
    outs = []
    for t in range(T):
        w_oihw = jnp.transpose(weights[t], (3, 2, 0, 1))   # (Cout, Cin, K, K)
        y = jax.lax.conv_general_dilated(
            x[:, t], w_oihw, window_strides=(1, 1), padding="SAME",
            dimension_numbers=("NCHW", "OIHW", "NCHW"))
        y = y + biases[t].reshape(1, -1, 1, 1)
        y = jax.nn.sigmoid(y) if activation == "sigmoid" else jnp.maximum(y, 0.0)
        outs.append(y[:, None])
    return jnp.concatenate(outs, axis=1)


if __name__ == "__main__":
    # T=10 matches the module's `timesteps` and exercises the cdiv/tail-padding path
    # (Tb=4 -> grid of 3 parallel steps).
    B, T, Cin, Cout, H, W, K = 2, 10, 4, 8, 16, 16, 3
    activation = "sigmoid"

    key = jax.random.PRNGKey(0)
    kx, kp = jax.random.split(key)
    x = jax.random.normal(kx, (B, T, Cin, H, W), jnp.float32)
    weights, biases = _init_params(kp, T, Cin, Cout, K)

    out = activation_time_distribution(x, weights, biases, activation)
    out = jax.block_until_ready(out)

    ref = _reference(x, weights, biases, activation)
    assert out.shape == (B, T, Cout, H, W), out.shape
    # bf16 operands (+ approx reciprocal in sigmoid) vs f32 reference: loosen tolerance.
    assert jnp.allclose(out, ref, atol=2e-2, rtol=2e-2), "mismatch vs reference conv"

    print("KERNEL_OK")
</pallas_src>

<mosaic_0001>
module attributes {stable_mosaic.version = 11 : i64} {
  func.func @_conv_block_kernel(%arg0: i32, %arg1: memref<1x148x512xbf16, #tpu.memory_space<vmem>>, %arg2: memref<1x32x148xbf16, #tpu.memory_space<vmem>>, %arg3: memref<1x32x512xf32, #tpu.memory_space<vmem>>) attributes {dimension_semantics = [#tpu.dimension_semantics<parallel>], iteration_bounds = array<i64: 3>, scalar_prefetch = 0 : i64, scratch_operands = 0 : i64, tpu.core_type = #tpu.core_type<tc>, window_params = [{transform_indices = @transform_0, window_bounds = array<i64: 1, 148, 512>}, {transform_indices = @transform_1, window_bounds = array<i64: 1, 32, 148>}, {transform_indices = @transform_2, window_bounds = array<i64: 1, 32, 512>}]} {
    %c0 = arith.constant 0 : index
    %c0_0 = arith.constant 0 : index
    %c0_1 = arith.constant 0 : index
    %0 = vector.load %arg2[%c0, %c0_0, %c0_1] : memref<1x32x148xbf16, #tpu.memory_space<vmem>>, vector<1x32x148xbf16>
    %1 = vector.shape_cast %0 : vector<1x32x148xbf16> to vector<32x148xbf16>
    %c0_2 = arith.constant 0 : index
    %c0_3 = arith.constant 0 : index
    %c0_4 = arith.constant 0 : index
    %2 = vector.load %arg1[%c0_2, %c0_3, %c0_4] : memref<1x148x512xbf16, #tpu.memory_space<vmem>>, vector<1x148x512xbf16>
    %3 = vector.shape_cast %2 : vector<1x148x512xbf16> to vector<148x512xbf16>
    %cst = arith.constant dense<0.000000e+00> : vector<32x512xf32>
    %4 = tpu.matmul %1, %3, %cst {dimension_numbers = #tpu.dot_dimension_numbers<[1], [0], [0], [1], [0, 0, 1, 1], [], []>} : vector<32x148xbf16>, vector<148x512xbf16>, vector<32x512xf32> -> vector<32x512xf32>
    %cst_5 = arith.constant 0.000000e+00 : f32
    %5 = vector.broadcast %cst_5 : f32 to vector<32x512xf32>
    %6 = arith.subf %5, %4 : vector<32x512xf32>
    %7 = math.exp %6 : vector<32x512xf32>
    %cst_6 = arith.constant 1.000000e+00 : f32
    %8 = vector.broadcast %cst_6 : f32 to vector<32x512xf32>
    %9 = arith.addf %8, %7 : vector<32x512xf32>
    %10 = tpu.reciprocal %9 {approx = true} : vector<32x512xf32> -> vector<32x512xf32>
    %c0_7 = arith.constant 0 : index
    %c0_8 = arith.constant 0 : index
    %c0_9 = arith.constant 0 : index
    %11 = vector.load %arg3[%c0_7, %c0_8, %c0_9] : memref<1x32x512xf32, #tpu.memory_space<vmem>>, vector<1x32x512xf32>
    %12 = vector.shape_cast %11 : vector<1x32x512xf32> to vector<32x512xf32>
    %13 = vector.shape_cast %10 : vector<32x512xf32> to vector<1x32x512xf32>
    tpu.vector_store %arg3[%c0_7, %c0_8, %c0_9], %13 {strides = array<i32>} : memref<1x32x512xf32, #tpu.memory_space<vmem>>, vector<1x32x512xf32>,
    return
  }
  func.func @transform_0(%arg0: i32) -> (i32, i32, i32) {
    %c0_i32 = arith.constant 0 : i32
    %c0_i32_0 = arith.constant 0 : i32
    %c0_i32_1 = arith.constant 0 : i32
    return %arg0, %c0_i32, %c0_i32_0 : i32, i32, i32
  }
  func.func @transform_1(%arg0: i32) -> (i32, i32, i32) {
    %c0_i32 = arith.constant 0 : i32
    %c0_i32_0 = arith.constant 0 : i32
    %c0_i32_1 = arith.constant 0 : i32
    return %arg0, %c0_i32, %c0_i32_0 : i32, i32, i32
  }
  func.func @transform_2(%arg0: i32) -> (i32, i32, i32) {
    %c0_i32 = arith.constant 0 : i32
    %c0_i32_0 = arith.constant 0 : i32
    %c0_i32_1 = arith.constant 0 : i32
    return %arg0, %c0_i32, %c0_i32_0 : i32, i32, i32
  }
}

</mosaic_0001>

<bundles_post_ra>
// kernel: tpu_custom_call.1
= control target key start
LH: loop header
LB: loop body
LE: loop exit
PB: predicated region body
PF: predicated region fallthrough
CT: control target
= control target key end

     0   :  { %7 = vsyncpa [#allocation3], 0  ;;  %s1461_s0 = inlined_call_operand.hbm [shape: bf16[3,148,512], index: 0, kind: input, shape index: {}]   ;;  %s1462_s1 = inlined_call_operand.hbm [shape: bf16[3,32,148], index: 1, kind: input, shape index: {}]   ;;  %s1463_s2 = inlined_call_operand.hbm [shape: f32[3,32,512], index: 2, kind: output, shape index: {}]  }
   0x1   :  { %9 = vsyncpa [#allocation3 + $0x1], 0 }
   0x2   :  { %10 = vsyncpa [#allocation6], 0 }
   0x3   :  { %12 = vsyncpa [#allocation6 + $0x1], 0 }
   0x4   :  { %13 = vsyncpa [#allocation4], 0 }
   0x5   :  { %15 = vsyncpa [#allocation4 + $0x1], 0  ;;  %s1190_s9 = smov 0   ;;  %s1192_s10 = smov 0  }
   0x6   :  { %s1194_s11 = smov 0   ;;  %s1196_s12 = smov 0  }
   0x7 LB: > { %s1211_s13 = sadd.s32 4294967295, %s1164_s12   ;;  %s785_s14 = sadd.s32 4294967294, %s1164_s12   ;;  %s1164_s12 = sphi %s1196_s12, %s1477_s12   ;;  %s1160_s11 = sphi %s1194_s11, %s1476_s11   ;;  %s1156_s10 = sphi %s1192_s10, %s1475_s10   ;;  %s1152_s9 = sphi %s1190_s9, %s1474_s9  }
   0x8   : > { %s1215_s15 = sadd.s32 1, %s1164_s12   ;;  %s28_s16 = sadd.s32 1, %s1160_s11 }
   0x9   : > { %s25_s17 = ssub.s32 %s1164_s12, %s1215_s15  ;;  %p35_p0 = scmp.ne.s32.totalorder %s1160_s11, %s1156_s10 }
   0xa   : > { %p26_p1 = scmp.eq.s32.totalorder %s25_s17, 0  ;;  %p36_p2 = scmp.eq.s32.totalorder %s1164_s12, 0 }
   0xb   : > { %p41_p3 = scmp.ne.s32.totalorder %s1156_s10, %s1152_s9  ;;  %p42_p4 = scmp.eq.s32.totalorder %s1211_s13, 0 }
   0xc   : > { %s1227_s18 = scalar_select %p26_p1, %s1160_s11, %s28_s16  }
   0xd   : > { %p37_p5 = por %p36_p2, %p35_p0  ;;  %p1229_p6 = por %p42_p4, %p41_p3 }
   0xe   : > { %p91_p7 = scmp.eq.s32.totalorder %s1211_s13, 2  ;;  %p97_p8 = scmp.eq.s32.totalorder %s785_s14, 2 }
   0xf   : > { %s1466_s19 = scalar_select %p1229_p6, 1, 0 }
  0x10   : > { %p872_p9 = scmp.lt.s32.totalorder %s1164_s12, 3  ;;  %p1235_p10 = por %p91_p7, %p35_p0 }
  0x11   : > { %p1239_p11 = por %p97_p8, %p41_p3  ;;  %s1244_s22 = sand.u32 1, %s1160_s11  }
  0x12   : > { %s1467_s20 = scalar_select %p1235_p10, 1, 0 }
  0x13   : > { %s1468_s21 = scalar_select %p1239_p11, 1, 0 }
  0x14   : > { %s853_s23 = smul.u32 4864, %s1164_s12  ;;  %p1253_p12 = pnand %p872_p9, %p37_p5 }
  0x15   : > { %s852_s24 = smul.u32 304, %s1244_s22  ;;  %s118_s3 = scalar_lea.sflag [#allocation3], %s1244_s22 }
  0x16   : > { %s1251_s27 = scalar_lea.hbm %s1461_s0, %s853_s23  ;;  %p1042_p0 = pneg %p1253_p12 }
  0x17   : > { %s121_s29 = scalar_lea.vmem [#allocation2], %s852_s24  ;;  %s1040_s4 = scalar_lea.hbm %s1251_s27, 4864 }
  0x18   : > { %s128_s30 = sshll.u32 %s121_s29, 4  ;;  %p1041_p13 = scmp.ne.s32.totalorder %s1251_s27, %s1040_s4  ;;  %s1257_s30 = int_to_ptr.vmem [resolvable:$true] %s128_s30 }
  0x19   : > { %s1045_s7 = scalar_lea.hbm %s1461_s0, 14592  ;;  %p1046_p3 = scmp.lt.s32.totalorder %s1251_s27, %s1461_s0 }
  0x1a   : > { %p1043_p1 = pnand %p1042_p0, %p1041_p13  ;;  %p1047_p4 = scmp.lt.s32.totalorder %s1045_s7, %s1040_s4 }
  0x1c   : > { %p1044_p2 = pneg %p1043_p1  ;;  %p1048_p5 = por %p1047_p4, %p1046_p3 }
  0x1e   : > { %p1049_p7 = pnand %p1048_p5, %p1044_p2 }
  0x20   : > { %1052 = shalt.err (!%p1049_p7)
}
  0x21   : > { %s1053_s16 = scalar_lea.vmem %s1257_s30, 4864  ;;  %s1166_s17 = smov [#allocation2]  }
  0x22   : > { %p1054_p8 = scmp.ne.s32.totalorder %s1257_s30, %s1053_s16  ;;  %s1058_s23 = sshll.u32 %s1166_s17, 4  ;;  %s1059_s23 = int_to_ptr.vmem [resolvable:$false] %s1058_s23 }
  0x23   : > { %s1060_s24 = scalar_lea.vmem %s1059_s23, 9728  ;;  %p1061_p1 = scmp.lt.s32.totalorder %s1257_s30, %s1059_s23 }
  0x24   : > { %p1056_p9 = pnand %p1054_p8, %p1042_p0  ;;  %p1062_p11 = scmp.lt.s32.totalorder %s1060_s24, %s1053_s16 }
  0x26   : > { %p1057_p13 = pneg %p1056_p9  ;;  %p1063_p10 = por %p1062_p11, %p1061_p1 }
  0x28   : > { %p1064_p3 = pnand %p1063_p10, %p1057_p13 }
  0x2a   : > { %1067 = shalt.err (!%p1064_p3)
}
  0x2b   : > { %s1167_s25 = smov 256   ;;  %s1168_s26 = smov 16  }
  0x2c   : > { %864 = dma.hbm_to_vmem [thread:$0]  (!%p1253_p12), %s1251_s27, 4864, %s1257_s30, %s118_s3, %s1167_s25, %s1167_s25, %s1168_s26  }
  0x2d   : > { %p792_p2 = scmp.ge.s32.totalorder %s1164_s12, 1  ;;  %p157_p4 = scmp.lt.s32.totalorder %s1164_s12, 4 }
  0x2e   : > { %s789_s29 = sshll.u32 %s1244_s22, 5  ;;  %s850_s5 = sshll.u32 %s1164_s12, 9 }
  0x2f   : > { %p1289_p10 = pnand %p792_p2, %p157_p4  ;;  %s142_s6 = scalar_lea.vmem [#allocation5], %s789_s29 }
  0x30   : > { %s149_s7 = sshll.u32 %s142_s6, 4  ;;  %s1297_s16 = scalar_lea.hbm %s1462_s1, %s850_s5  ;;  %s1299_s7 = int_to_ptr.vmem [resolvable:$true] %s149_s7 }
  0x31   : > { %s139_s27 = scalar_lea.sflag [#allocation6], %s1244_s22  ;;  %s1068_s30 = scalar_lea.hbm %s1297_s16, 512 }
  0x32   : > { %p1069_p11 = scmp.ne.s32.totalorder %s1297_s16, %s1068_s30  ;;  %s1073_s23 = scalar_lea.hbm %s1462_s1, 1536 }
  0x33   : > { %p1074_p8 = scmp.lt.s32.totalorder %s1297_s16, %s1462_s1  ;;  %p1075_p9 = scmp.lt.s32.totalorder %s1073_s23, %s1068_s30 }
  0x34   : > { %p1071_p5 = pnand %p1069_p11, %p1042_p0 }
  0x35   : > { %p1076_p13 = por %p1075_p9, %p1074_p8 }
  0x36   : > { %p1072_p7 = pneg %p1071_p5 }
  0x38   : > { %p1077_p1 = pnand %p1076_p13, %p1072_p7 }
  0x3a   : > { %1080 = shalt.err (!%p1077_p1)
}
  0x3b   : > { %s1081_s26 = scalar_lea.vmem %s1299_s7, 512  ;;  %s1169_s29 = smov [#allocation5]  }
  0x3c   : > { %p1082_p3 = scmp.ne.s32.totalorder %s1299_s7, %s1081_s26  ;;  %s1086_s5 = sshll.u32 %s1169_s29, 4  ;;  %s1087_s5 = int_to_ptr.vmem [resolvable:$false] %s1086_s5 }
  0x3d   : > { %s1088_s6 = scalar_lea.vmem %s1087_s5, 1024  ;;  %p1089_p11 = scmp.lt.s32.totalorder %s1299_s7, %s1087_s5 }
  0x3e   : > { %p1084_p2 = pnand %p1082_p3, %p1042_p0  ;;  %p1090_p5 = scmp.lt.s32.totalorder %s1088_s6, %s1081_s26 }
  0x40   : > { %p1085_p4 = pneg %p1084_p2  ;;  %p1091_p6 = por %p1090_p5, %p1089_p11 }
  0x42   : > { %p1092_p8 = pnand %p1091_p6, %p1085_p4 }
  0x44   : > { %1095 = shalt.err (!%p1092_p8)
}
  0x45   : > { %s1170_s8 = smov 128   ;;  %s1171_s14 = smov 8  }
  0x46   : > { %867 = dma.hbm_to_vmem [thread:$0]  (!%p1253_p12), %s1297_s16, 512, %s1299_s7, %s139_s27, %s1170_s8, %s1170_s8, %s1171_s14  }
  0x47   : > { %161 = sbr.rel (%p1289_p10) target bundleno = 377 (0x179), region = 28  ;;  %s1329_s30 = sand.u32 (!%p1289_p10), 1, %s1156_s10  }
  0x48   : > { %s854_s3 = smul.u32 (!%p1289_p10), 304, %s1329_s30  ;;  %s164_s17 = scalar_lea.sflag (!%p1289_p10), [#allocation3], %s1329_s30 }
  0x49   : > { %p1471_p6 = scmp.ne.s32.totalorder (!%p1289_p10), %s1466_s19, 0 }
  0x4a   : > { %s1333_s23 = scalar_lea.vmem (!%p1289_p10), [#allocation2], %s854_s3 }
  0x4c   : > { %1139 = dma.done.wait (%p1471_p6), %s164_s17, 4864  }
  0x4d   : > { %1141 = vsyncadd (%p1471_p6), %s164_s17, 4294962432  ;;  %s793_s22 = sshll.u32 %s1329_s30, 5  ;;  %s173_s28 = scalar_lea.sflag [#allocation6], %s1329_s30 }
  0x4e   : > { %s1341_s4 = scalar_lea.vmem [#allocation5], %s793_s22 }
  0x4f   : > { %1143 = dma.done.wait (%p1471_p6), %s173_s28, 512  }
  0x50   : > { %1145 = vsyncadd (%p1471_p6), %s173_s28, 4294966784  ;;  %v912_v0 = vld [vmem:[%s1333_s23 + $0xe4] ss:$16 sps:$4 sm:$0xff]   ;;  %v914_v1 = vld [vmem:[%s1333_s23 + $0xec] ss:$16 sps:$4 sm:$0xff]   ;;  %vm453_vm0 = vcmask 162816  }
  0x51   : > { %473 = vmatprep.subr.bf16.mxu0 %v912_v0  ;;  %v916_v2 = vld [vmem:[%s1333_s23 + $0xe0] ss:$16 sps:$4 sm:$0xff]   ;;  %v917_v3 = vld [vmem:[%s1333_s23 + $0xe8] ss:$16 sps:$4 sm:$0xff]   ;;  %526 = vmatprep.subr.bf16.mxu1 %v914_v1  ;;  %v918_v4 = vld [vmem:[%s1333_s23 + $0xc4] ss:$16 sps:$4 sm:$0xff]  }
  0x52   : > { %474 = vmatpush1.bf16.msra.mxu0 %v916_v2  ;;  %527 = vmatpush1.bf16.msra.mxu1 %v917_v3  ;;  %v920_v5 = vld [vmem:[%s1333_s23 + $0xcc] ss:$16 sps:$4 sm:$0xff]   ;;  %v922_v6 = vld [vmem:[%s1333_s23 + $0xc0] ss:$16 sps:$4 sm:$0xff]   ;;  %v923_v7 = vld [vmem:[%s1333_s23 + $0xc8] ss:$16 sps:$4 sm:$0xff]  }
  0x53   : > { %475 = vmatprep.subr.bf16.mxu0 %v918_v4  ;;  %528 = vmatprep.subr.bf16.mxu1 %v920_v5  ;;  %v924_v8 = vld [vmem:[%s1333_s23 + $0xa4] ss:$16 sps:$4 sm:$0xff]   ;;  %v926_v9 = vld [vmem:[%s1333_s23 + $0xac] ss:$16 sps:$4 sm:$0xff]   ;;  %v928_v10 = vld [vmem:[%s1333_s23 + $0xa0] ss:$16 sps:$4 sm:$0xff]  }
  0x54   : > { %v929_v11 = vld [vmem:[%s1333_s23 + $0xa8] ss:$16 sps:$4 sm:$0xff]   ;;  %v930_v12 = vld [vmem:[%s1333_s23 + $0x84] ss:$16 sps:$4 sm:$0xff]   ;;  %v932_v13 = vld [vmem:[%s1333_s23 + $0x8c] ss:$16 sps:$4 sm:$0xff]  }
  0x55   : > { %v934_v14 = vld [vmem:[%s1333_s23 + $0x80] ss:$16 sps:$4 sm:$0xff]   ;;  %v935_v15 = vld [vmem:[%s1333_s23 + $0x88] ss:$16 sps:$4 sm:$0xff]   ;;  %v936_v16 = vld [vmem:[%s1333_s23 + $0x64] ss:$16 sps:$4 sm:$0xff]  }
  0x56   : > { %476 = vmatpush1.bf16.msra.mxu0 %v922_v6  ;;  %529 = vmatpush1.bf16.msra.mxu1 %v923_v7  ;;  %v938_v17 = vld [vmem:[%s1333_s23 + $0x6c] ss:$16 sps:$4 sm:$0xff]   ;;  %v940_v18 = vld [vmem:[%s1333_s23 + $0x60] ss:$16 sps:$4 sm:$0xff]   ;;  %v941_v19 = vld [vmem:[%s1333_s23 + $0x68] ss:$16 sps:$4 sm:$0xff]  }
  0x57   : > { %477 = vmatprep.subr.bf16.mxu0 %v924_v8  ;;  %530 = vmatprep.subr.bf16.mxu1 %v926_v9  ;;  %v942_v20 = vld [vmem:[%s1333_s23 + $0x44] ss:$16 sps:$4 sm:$0xff]   ;;  %v944_v21 = vld [vmem:[%s1333_s23 + $0x4c] ss:$16 sps:$4 sm:$0xff]   ;;  %v946_v22 = vld [vmem:[%s1333_s23 + $0x40] ss:$16 sps:$4 sm:$0xff]  }
  0x58   : > { %v947_v23 = vld [vmem:[%s1333_s23 + $0x48] ss:$16 sps:$4 sm:$0xff]   ;;  %v948_v24 = vld [vmem:[%s1333_s23 + $0x24] ss:$16 sps:$4 sm:$0xff]   ;;  %v950_v25 = vld [vmem:[%s1333_s23 + $0x2c] ss:$16 sps:$4 sm:$0xff]  }
  0x59   : > { %v952_v26 = vld [vmem:[%s1333_s23 + $0x20] ss:$16 sps:$4 sm:$0xff]   ;;  %v953_v27 = vld [vmem:[%s1333_s23 + $0x28] ss:$16 sps:$4 sm:$0xff]   ;;  %v954_v28 = vld [vmem:[%s1333_s23 + $0x4] ss:$16 sps:$4 sm:$0xff]  }
  0x5a   : > { %478 = vmatpush1.bf16.msra.mxu0 %v928_v10  ;;  %531 = vmatpush1.bf16.msra.mxu1 %v929_v11  ;;  %v956_v29 = vld [vmem:[%s1333_s23 + $0xc] ss:$16 sps:$4 sm:$0xff]   ;;  %v243_v30 = vld [vmem:[%s1333_s23 + $0x120] sm:$0x33]  ;;  %v959_v34 = vld [vmem:[%s1333_s23 + $0x8] ss:$16 sps:$4 sm:$0xff]  }
  0x5b   : > { %479 = vmatprep.subr.bf16.mxu0 %v930_v12  ;;  %532 = vmatprep.subr.bf16.mxu1 %v932_v13  ;;  %v244_v31 = vld [vmem:[%s1333_s23 + $0x128] sm:$0x33]  ;;  %v958_v33 = vld [vmem:[%s1333_s23] ss:$16 sps:$4 sm:$0xff]   ;;  %v836_v35 = vcombine.high %v243_v30, %v243_v30  ;;  %v835_v37 = vcombine.low %v243_v30, %v243_v30  ;;  %vm460_vm1 = vcmask 1041408   ;;  %s794_s19 = sshll.u32 %s1329_s30, 7 }
  0x5c   : > { %v972_v32 = vld [vmem:[%s1341_s4 + $0x4] ss:$8 sps:$4 sm:$0xff]   ;;  %v838_v36 = vcombine.high %v244_v31, %v244_v31  ;;  %v837_v38 = vcombine.low %v244_v31, %v244_v31  ;;  %v968_v43 = vld [vmem:[%s1333_s23 + $0x100] ss:$16 sps:$4 sm:$0xff]   ;;  %v969_v44 = vld [vmem:[%s1333_s23 + $0x108] ss:$16 sps:$4 sm:$0xff]  }
  0x5d   : > { %840 = vmatprep.mubr.msk.bf16.mxu0 %vm453_vm0, %v972_v32  ;;  %843 = vmatprep.mubr.msk.bf16.mxu1 %vm453_vm0, %v972_v32  ;;  %v462_v39 = vsel %vm460_vm1, %v835_v37, 0  ;;  %v964_v41 = vld [vmem:[%s1333_s23 + $0x104] ss:$16 sps:$4 sm:$0xff]   ;;  %v966_v42 = vld [vmem:[%s1333_s23 + $0x10c] ss:$16 sps:$4 sm:$0xff]   ;;  %s1394_s7 = scalar_lea.vmem [#allocation7], %s794_s19 }
  0x5e   : > { %480 = vmatpush1.bf16.msra.mxu0 %v934_v14  ;;  %533 = vmatpush1.bf16.msra.mxu1 %v935_v15  ;;  %v468_v40 = vsel %vm460_vm1, %v837_v38, 0  ;;  %v970_v45 = vld [vmem:[%s1341_s4] ss:$8 sps:$4 sm:$0xff]   ;;  %v973_v46 = vld [vmem:[%s1341_s4 + $0x14] ss:$8 sps:$4 sm:$0xff]   ;;  %s851_s16 = sshll.u32 %s1211_s13, 11 }
  0x5f   : > { %481 = vmatprep.subr.bf16.mxu0 %v936_v16  ;;  %534 = vmatprep.subr.bf16.mxu1 %v938_v17  ;;  %v975_v47 = vld [vmem:[%s1341_s4 + $0x10] ss:$8 sps:$4 sm:$0xff]   ;;  %s689_s27 = sshll.u32 %s1394_s7, 4  ;;  %s1414_s26 = scalar_lea.hbm %s1463_s2, %s851_s16  ;;  %s1416_s27 = int_to_ptr.vmem [resolvable:$true] %s689_s27 }
  0x60   : > { %s676_s13 = scalar_lea.sflag [#allocation4], %s1329_s30  ;;  %s1096_s29 = scalar_lea.vmem %s1416_s27, 2048 }
  0x61   : > { %p1097_p12 = scmp.ne.s32.totalorder %s1416_s27, %s1096_s29  ;;  %p1472_p0 = scmp.ne.s32.totalorder %s1467_s20, 0 }
  0x62   : > { %482 = vmatpush1.bf16.msra.mxu0 %v940_v18  ;;  %535 = vmatpush1.bf16.msra.mxu1 %v941_v19  ;;  %s1172_s5 = smov [#allocation7]  }
  0x63   : > { %483 = vmatprep.subr.bf16.mxu0 %v942_v20  ;;  %536 = vmatprep.subr.bf16.mxu1 %v944_v21  ;;  %p1098_p10 = pnand %p1097_p12, %p1472_p0  ;;  %s1100_s6 = sshll.u32 %s1172_s5, 4  ;;  %s1101_s6 = int_to_ptr.vmem [resolvable:$false] %s1100_s6 }
  0x64   : > { %s1102_s8 = scalar_lea.vmem %s1101_s6, 4096  ;;  %p1103_p9 = scmp.lt.s32.totalorder %s1416_s27, %s1101_s6 }
  0x65   : > { %p1099_p7 = pneg %p1098_p10  ;;  %p1104_p13 = scmp.lt.s32.totalorder %s1102_s8, %s1096_s29 }
  0x66   : > { %484 = vmatpush1.bf16.msra.mxu0 %v946_v22  ;;  %537 = vmatpush1.bf16.msra.mxu1 %v947_v23 }
  0x67   : > { %485 = vmatprep.subr.bf16.mxu0 %v948_v24  ;;  %538 = vmatprep.subr.bf16.mxu1 %v950_v25  ;;  %p1105_p1 = por %p1104_p13, %p1103_p9 }
  0x69   : > { %p1106_p3 = pnand %p1105_p1, %p1099_p7 }
  0x6a   : > { %486 = vmatpush1.bf16.msra.mxu0 %v952_v26  ;;  %539 = vmatpush1.bf16.msra.mxu1 %v953_v27 }
  0x6b   : > { %487 = vmatprep.subr.bf16.mxu0 %v954_v28  ;;  %540 = vmatprep.subr.bf16.mxu1 %v956_v29 }
  0x6e   : > { %488 = vmatpush1.bf16.msra.mxu0 %v958_v33  ;;  %541 = vmatpush1.bf16.msra.mxu1 %v959_v34 }
  0x6f   : > { %839 = vmatprep.subr.msk.bf16.mxu0 %vm460_vm1, %v836_v35  ;;  %842 = vmatprep.subr.msk.bf16.mxu1 %vm460_vm1, %v838_v36 }
  0x72   : > { %502 = vmatpush2.bf16.msra.mxu0 %v462_v39  ;;  %555 = vmatpush2.bf16.msra.mxu1 %v468_v40 }
  0x73   : > { %503 = vmatprep.subr.bf16.mxu0 %v964_v41  ;;  %556 = vmatprep.subr.bf16.mxu1 %v966_v42 }
  0x76   : > { %504 = vmatpush2.bf16.msra.mxu0 %v968_v43  ;;  %557 = vmatpush2.bf16.msra.mxu1 %v969_v44 }
  0x79   : > { %506 = vmatmul.mubr.bf16.vlgmr.msra.gmra.mxu0 %v970_v45  ;;  %559 = vmatmul.mubr.bf16.vlgmr.msra.gmra.mxu1 %v970_v45 }
  0x7a   : > { %841 = vmatprep.mubr.msk.bf16.mxu0 %vm453_vm0, %v973_v46  ;;  %844 = vmatprep.mubr.msk.bf16.mxu1 %vm453_vm0, %v973_v46 }
  0x81   : > { %516 = vmatmul.mubr.bf16.gmra.mxu0 %v975_v47  ;;  %569 = vmatmul.mubr.bf16.gmra.mxu1 %v975_v47 }
 0x139   : > { %v507_v48 = vpop.f32.mrf.mxu0  ;;  %v560_v49 = vpop.f32.mrf.mxu1 }
 0x13a   : > { %v579_v50 = vsub.f32 0.0, %v507_v48  ;;  %v581_v51 = vsub.f32 0.0, %v560_v49 }
 0x13b   : > { %v509_v52 = vpop.f32.mrf.mxu0  ;;  %v562_v53 = vpop.f32.mrf.mxu1 }
 0x13c   : > { %v595_v54 = vmul.f32 1.442695, %v579_v50  ;;  %v599_v55 = vmul.f32 1.442695, %v581_v51  ;;  %v580_v56 = vsub.f32 0.0, %v509_v52  ;;  %v582_v57 = vsub.f32 0.0, %v562_v53 }
 0x13d   : > { %v511_v58 = vpop.f32.mrf.mxu0  ;;  %v564_v59 = vpop.f32.mrf.mxu1 }
 0x13e   : > { %976 = vpow2.f32 %v595_v54  ;;  %v597_v60 = vmul.f32 1.442695, %v580_v56  ;;  %v601_v61 = vmul.f32 1.442695, %v582_v57  ;;  %v583_v62 = vsub.f32 0.0, %v511_v58 }
 0x13f   : > { %978 = vpow2.f32 %v599_v55  ;;  %v585_v63 = vsub.f32 0.0, %v564_v59  ;;  %v513_v0 = vpop.f32.mrf.mxu0  ;;  %v566_v1 = vpop.f32.mrf.mxu1 }
 0x140   : > { %980 = vpow2.f32 %v597_v60  ;;  %v603_v2 = vmul.f32 1.442695, %v583_v62  ;;  %v584_v3 = vsub.f32 0.0, %v513_v0  ;;  %v586_v4 = vsub.f32 0.0, %v566_v1 }
 0x141   : > { %982 = vpow2.f32 %v601_v61  ;;  %v607_v5 = vmul.f32 1.442695, %v585_v63  ;;  %v517_v6 = vpop.f32.mrf.mxu0  ;;  %v570_v7 = vpop.f32.mrf.mxu1 }
 0x142   : > { %984 = vpow2.f32 %v603_v2  ;;  %v605_v8 = vmul.f32 1.442695, %v584_v3  ;;  %v609_v9 = vmul.f32 1.442695, %v586_v4  ;;  %v587_v10 = vsub.f32 0.0, %v517_v6 }
 0x143   : > { %986 = vpow2.f32 %v607_v5  ;;  %v589_v11 = vsub.f32 0.0, %v570_v7  ;;  %v519_v12 = vpop.f32.mrf.mxu0  ;;  %v572_v13 = vpop.f32.mrf.mxu1 }
 0x144   : > { %988 = vpow2.f32 %v605_v8  ;;  %v611_v14 = vmul.f32 1.442695, %v587_v10  ;;  %v588_v15 = vsub.f32 0.0, %v519_v12  ;;  %v590_v16 = vsub.f32 0.0, %v572_v13 }
 0x145   : > { %990 = vpow2.f32 %v609_v9  ;;  %v615_v17 = vmul.f32 1.442695, %v589_v11  ;;  %v521_v18 = vpop.f32.mrf.mxu0  ;;  %v574_v19 = vpop.f32.mrf.mxu1 }
 0x146   : > { %992 = vpow2.f32 %v611_v14  ;;  %v613_v20 = vmul.f32 1.442695, %v588_v15  ;;  %v617_v21 = vmul.f32 1.442695, %v590_v16  ;;  %v591_v22 = vsub.f32 0.0, %v521_v18 }
 0x147   : > { %994 = vpow2.f32 %v615_v17  ;;  %v593_v23 = vsub.f32 0.0, %v574_v19  ;;  %v523_v24 = vpop.f32.mrf.mxu0  ;;  %v576_v25 = vpop.f32.mrf.mxu1 }
 0x148   : > { %996 = vpow2.f32 %v613_v20  ;;  %v619_v26 = vmul.f32 1.442695, %v591_v22  ;;  %v592_v27 = vsub.f32 0.0, %v523_v24  ;;  %v594_v28 = vsub.f32 0.0, %v576_v25 }
 0x149   : > { %998 = vpow2.f32 %v617_v21  ;;  %v623_v29 = vmul.f32 1.442695, %v593_v23 }
 0x14a   : > { %1000 = vpow2.f32 %v619_v26  ;;  %v621_v30 = vmul.f32 1.442695, %v592_v27  ;;  %v625_v31 = vmul.f32 1.442695, %v594_v28 }
 0x14b   : > { %v977_v32 = vpop.eup %976  ;;  %1002 = vpow2.f32 %v623_v29 }
 0x14c   : > { %v979_v33 = vpop.eup %978  ;;  %v627_v34 = vadd.f32 1.0, %v977_v32  ;;  %1004 = vpow2.f32 %v621_v30 }
 0x14d   : > { %v981_v35 = vpop.eup %980  ;;  %v629_v36 = vadd.f32 1.0, %v979_v33  ;;  %1006 = vpow2.f32 %v625_v31 }
 0x14e   : > { %v983_v37 = vpop.eup %982  ;;  %1008 = vrcp.f32 %v627_v34  ;;  %v628_v38 = vadd.f32 1.0, %v981_v35 }
 0x14f   : > { %v985_v39 = vpop.eup %984  ;;  %1010 = vrcp.f32 %v629_v36  ;;  %v630_v40 = vadd.f32 1.0, %v983_v37 }
 0x150   : > { %v987_v41 = vpop.eup %986  ;;  %1012 = vrcp.f32 %v628_v38  ;;  %v631_v42 = vadd.f32 1.0, %v985_v39 }
 0x151   : > { %v989_v43 = vpop.eup %988  ;;  %1014 = vrcp.f32 %v630_v40  ;;  %v633_v44 = vadd.f32 1.0, %v987_v41 }
 0x152   : > { %v991_v45 = vpop.eup %990  ;;  %1016 = vrcp.f32 %v631_v42  ;;  %v632_v46 = vadd.f32 1.0, %v989_v43 }
 0x153   : > { %v993_v47 = vpop.eup %992  ;;  %1018 = vrcp.f32 %v633_v44  ;;  %v634_v48 = vadd.f32 1.0, %v991_v45 }
 0x154   : > { %v995_v49 = vpop.eup %994  ;;  %1020 = vrcp.f32 %v632_v46  ;;  %v635_v50 = vadd.f32 1.0, %v993_v47 }
 0x155   : > { %v997_v51 = vpop.eup %996  ;;  %1022 = vrcp.f32 %v634_v48  ;;  %v637_v52 = vadd.f32 1.0, %v995_v49 }
 0x156   : > { %v999_v53 = vpop.eup %998  ;;  %1024 = vrcp.f32 %v635_v50  ;;  %v636_v54 = vadd.f32 1.0, %v997_v51 }
 0x157   : > { %v1001_v55 = vpop.eup %1000  ;;  %1026 = vrcp.f32 %v637_v52  ;;  %v638_v56 = vadd.f32 1.0, %v999_v53 }
 0x158   : > { %v1003_v57 = vpop.eup %1002  ;;  %1028 = vrcp.f32 %v636_v54  ;;  %v639_v58 = vadd.f32 1.0, %v1001_v55 }
 0x159   : > { %v1005_v59 = vpop.eup %1004  ;;  %1030 = vrcp.f32 %v638_v56  ;;  %v641_v60 = vadd.f32 1.0, %v1003_v57 }
 0x15a   : > { %v1007_v61 = vpop.eup %1006  ;;  %1032 = vrcp.f32 %v639_v58  ;;  %v640_v62 = vadd.f32 1.0, %v1005_v59 }
 0x15b   : > { %v1009_v63 = vpop.eup %1008  ;;  %1034 = vrcp.f32 %v641_v60  ;;  %v642_v0 = vadd.f32 1.0, %v1007_v61 }
 0x15c   : > { %v1011_v1 = vpop.eup %1010  ;;  %659 = vst [vmem:[%s1394_s7] sm:$0xff] %v1009_v63  ;;  %1036 = vrcp.f32 %v640_v62 }
 0x15d   : > { %v1013_v2 = vpop.eup %1012  ;;  %661 = vst [vmem:[%s1394_s7 + $0x10] sm:$0xff] %v1011_v1  ;;  %1038 = vrcp.f32 %v642_v0 }
 0x15e   : > { %v1015_v3 = vpop.eup %1014  ;;  %660 = vst [vmem:[%s1394_s7 + $0x8] sm:$0xff] %v1013_v2 }
 0x15f   : > { %v1017_v4 = vpop.eup %1016  ;;  %662 = vst [vmem:[%s1394_s7 + $0x18] sm:$0xff] %v1015_v3 }
 0x160   : > { %v1019_v5 = vpop.eup %1018  ;;  %663 = vst [vmem:[%s1394_s7 + $0x20] sm:$0xff] %v1017_v4 }
 0x161   : > { %v1021_v6 = vpop.eup %1020  ;;  %665 = vst [vmem:[%s1394_s7 + $0x30] sm:$0xff] %v1019_v5 }
 0x162   : > { %v1023_v7 = vpop.eup %1022  ;;  %664 = vst [vmem:[%s1394_s7 + $0x28] sm:$0xff] %v1021_v6 }
 0x163   : > { %v1025_v8 = vpop.eup %1024  ;;  %666 = vst [vmem:[%s1394_s7 + $0x38] sm:$0xff] %v1023_v7 }
 0x164   : > { %v1027_v9 = vpop.eup %1026  ;;  %667 = vst [vmem:[%s1394_s7 + $0x40] sm:$0xff] %v1025_v8 }
 0x165   : > { %v1029_v10 = vpop.eup %1028  ;;  %669 = vst [vmem:[%s1394_s7 + $0x50] sm:$0xff] %v1027_v9 }
 0x166   : > { %v1031_v11 = vpop.eup %1030  ;;  %668 = vst [vmem:[%s1394_s7 + $0x48] sm:$0xff] %v1029_v10 }
 0x167   : > { %v1033_v12 = vpop.eup %1032  ;;  %670 = vst [vmem:[%s1394_s7 + $0x58] sm:$0xff] %v1031_v11 }
 0x168   : > { %v1035_v13 = vpop.eup %1034  ;;  %671 = vst [vmem:[%s1394_s7 + $0x60] sm:$0xff] %v1033_v12 }
 0x169   : > { %v1037_v14 = vpop.eup %1036  ;;  %673 = vst [vmem:[%s1394_s7 + $0x70] sm:$0xff] %v1035_v13 }
 0x16a   : > { %v1039_v15 = vpop.eup %1038  ;;  %672 = vst [vmem:[%s1394_s7 + $0x68] sm:$0xff] %v1037_v14 }
 0x16b   : > { %674 = vst [vmem:[%s1394_s7 + $0x78] sm:$0xff] %v1039_v15 }
 0x16c   : > { %1109 = shalt.err (!%p1106_p3)
}
 0x16d   : > { %s1110_s14 = scalar_lea.hbm %s1414_s26, 2048  ;;  %s1114_s23 = scalar_lea.hbm %s1463_s2, 6144 }
 0x16e   : > { %p1111_p2 = scmp.ne.s32.totalorder %s1414_s26, %s1110_s14  ;;  %p1115_p5 = scmp.lt.s32.totalorder %s1414_s26, %s1463_s2 }
 0x16f   : > { %p1116_p8 = scmp.lt.s32.totalorder %s1114_s23, %s1110_s14 }
 0x170   : > { %p1112_p4 = pnand %p1111_p2, %p1472_p0 }
 0x171   : > { %p1117_p6 = por %p1116_p8, %p1115_p5 }
 0x172   : > { %p1113_p11 = pneg %p1112_p4 }
 0x174   : > { %p1118_p12 = pnand %p1117_p6, %p1113_p11 }
 0x176   : > { %1121 = shalt.err (!%p1118_p12)
}
 0x177   : > { %s1173_s4 = smov 512   ;;  %s1174_s19 = smov 32  }
 0x178   : > { %859 = dma.vmem_to_hbm [thread:$0]  (%p1472_p0), %s1416_s27, 2048, %s1414_s26, %s676_s13, %s1173_s4, %s1173_s4, %s1174_s19  }
 0x179 PF: > { %p873_p10 = scmp.ge.s32.totalorder %s1164_s12, 2  ;;  %s704_s7 = sand.u32 1, %s1152_s9  }
 0x17a   : > { %p1473_p7 = scmp.ne.s32.totalorder %s1468_s21, 0  ;;  %s705_s16 = scalar_lea.sflag [#allocation4], %s704_s7 }
 0x17c   : > { %p869_p9 = pnand %p873_p10, %p1473_p7 }
 0x17e   : > { %p870_p13 = pneg %p869_p9 }
 0x180   : > { %1147 = dma.done.wait (%p870_p13), %s705_s16, 2048  }
 0x181   : > { %1149 = vsyncadd (%p870_p13), %s705_s16, 4294965248  ;;  %p18_p1 = scmp.ge.s32.totalorder %s1215_s15, 5   ;;  %s1474_s9 = smov %s1156_s10 }
 0x182   : > { %s1475_s10 = smov %s1160_s11  ;;  %s1476_s11 = smov %s1227_s18 }
 0x183   : > { %s1477_s12 = smov %s1215_s15  ;;  %20 = sbr.rel (!%p18_p1) target bundleno = 7 (0x7), region = 86 }
 0x188   :  { %710 = vsyncpa [#allocation3], 1 }
 0x189   :  { %712 = vsyncpa [#allocation3 + $0x1], 1 }
 0x18a   :  { %713 = vsyncpa [#allocation6], 1 }
 0x18b   :  { %715 = vsyncpa [#allocation6 + $0x1], 1 }
 0x18c   :  { %716 = vsyncpa [#allocation4], 1 }
 0x18d   :  { %718 = vsyncpa [#allocation4 + $0x1], 1 }

</bundles_post_ra>
